<compile_context>
chip_gen: v6e
topology: v6e:2x2x1
jax: 0.10.0
libtpu: 0.0.40
codegen_flags: <defaults>
</compile_context>

<pallas_src>
import functools

import jax
import jax.numpy as jnp
from jax.experimental import pallas as pl
from jax.experimental.pallas import tpu as pltpu


def _proposal_kernel(x_ref, w1_ref, b1_ref, wh_ref, bh_ref,
                     conf_ref, reg_ref, *, B, NA):
    """One grid step = one spatial tile (TW lanes) of the whole batch.

    x_ref   : (B, 9*Cin, TW)  im2col'd input, channel-major
    w1_ref  : (Chid, 9*Cin)   folded conv1 weights
    b1_ref  : (Chid, 1)
    wh_ref  : (5*NA, Chid)    fused [conf_head ; reg_head] weights
    bh_ref  : (5*NA, 1)
    conf_ref: (B, NA, TW)
    reg_ref : (B, 4*NA, TW)
    """
    w1 = w1_ref[...]
    b1 = b1_ref[...]
    wh = wh_ref[...]
    bh = bh_ref[...]
    for b in range(B):  # B is small & static -> unrolled, no per-batch grid step
        # conv1 (3x3, padding=1) as a single dot with K = 9*Cin, N = TW lanes.
        hidden = jnp.dot(w1, x_ref[b], preferred_element_type=jnp.float32)
        hidden = jnp.maximum(hidden + b1, 0.0)       # dropout==identity (eval) + ReLU
        # fused conf/reg 1x1-conv heads: one dot, split afterwards in VMEM.
        heads = jnp.dot(wh, hidden.astype(wh.dtype),
                        preferred_element_type=jnp.float32) + bh
        conf_ref[b] = heads[:NA].astype(conf_ref.dtype)
        reg_ref[b] = heads[NA:].astype(reg_ref.dtype)


def _choose_spatial_tile(HW, bytes_per_lane, vmem_budget=8 * 1024 * 1024):
    """Pick a lane-tile TW (multiple of 128 dividing H*W) for the spatial axis."""
    if HW % 128 != 0:
        return HW                       # odd/small maps: single full-extent tile
    best = 128
    tw = 128
    while tw <= HW:
        if HW % tw == 0 and tw * bytes_per_lane <= vmem_budget:
            best = tw
        tw += 128
    # Prefer >= 2 grid steps so both v7x TensorCores get work.
    if best == HW and HW % 256 == 0:
        best = HW // 2
    return best


def proposal_module_forward(feature_map_nchw, params):
    """Eval-mode forward. feature_map_nchw: (B, Cin, H, W) float32.

    Returns (conf_scores_pred, reg_offsets_pred) in NCHW, matching PyTorch:
      conf: (B, n_anchors, H, W)
      reg : (B, 4*n_anchors, H, W)
    """
    w1, b1, wc, bc, wr, br = (params["w1"], params["b1"], params["wc"],
                              params["bc"], params["wr"], params["br"])
    B, Cin, H, W = feature_map_nchw.shape
    Chid = w1.shape[-1]
    NA = wc.shape[-1]
    HW = H * W
    K = 9 * Cin

    # --- im2col in channel-major: (B, 9*Cin, H*W) --------------------------
    # TODO(synk): for production channel counts (Cin~512) do the pad+im2col
    # in-kernel with halo-row DMA instead, to avoid the 9x HBM expansion.
    x_pad = jnp.pad(feature_map_nchw, ((0, 0), (0, 0), (1, 1), (1, 1)))
    taps = [x_pad[:, :, ky:ky + H, kx:kx + W]
            for ky in range(3) for kx in range(3)]
    x_col = jnp.stack(taps, axis=1).reshape(B, K, HW)

    # --- fold / fuse weights (trace-time, tiny) -----------------------------
    w1_flat = jnp.transpose(w1, (3, 0, 1, 2)).reshape(Chid, K)   # (Chid, 9*Cin)
    b1_cm = b1.reshape(Chid, 1)
    wh = jnp.concatenate([wc.T, wr.T], axis=0)                   # (5*NA, Chid)
    bh = jnp.concatenate([bc.reshape(-1), br.reshape(-1)]).reshape(5 * NA, 1)

    # bf16 MXU path only pays off once the contraction dims are wide enough
    # (v6e/v7x, Chid >= 128); keep f32 for the tiny test channels (and v5e).
    use_bf16 = Chid >= 128 and K >= 128
    compute_dtype = jnp.bfloat16 if use_bf16 else jnp.float32
    x_col = x_col.astype(compute_dtype)
    w1_flat = w1_flat.astype(compute_dtype)
    wh = wh.astype(compute_dtype)

    bytes_per_lane = 2 * 4 * B * (K + 5 * NA)        # ~double-buffered blocks
    TW = _choose_spatial_tile(HW, bytes_per_lane)
    n_sp = HW // TW

    kernel = functools.partial(_proposal_kernel, B=B, NA=NA)
    conf_flat, reg_flat = pl.pallas_call(
        kernel,
        out_shape=(
            jax.ShapeDtypeStruct((B, NA, HW), jnp.float32),
            jax.ShapeDtypeStruct((B, 4 * NA, HW), jnp.float32),
        ),
        grid_spec=pltpu.PrefetchScalarGridSpec(
            num_scalar_prefetch=0,
            grid=(n_sp,),
            in_specs=[
                pl.BlockSpec((B, K, TW), lambda t: (0, 0, t)),
                pl.BlockSpec((Chid, K), lambda t: (0, 0)),
                pl.BlockSpec((Chid, 1), lambda t: (0, 0)),
                pl.BlockSpec((5 * NA, Chid), lambda t: (0, 0)),
                pl.BlockSpec((5 * NA, 1), lambda t: (0, 0)),
            ],
            out_specs=[
                pl.BlockSpec((B, NA, TW), lambda t: (0, 0, t)),
                pl.BlockSpec((B, 4 * NA, TW), lambda t: (0, 0, t)),
            ],
        ),
        compiler_params=pltpu.CompilerParams(
            dimension_semantics=("parallel",),
            vmem_limit_bytes=32 * 1024 * 1024),
    )(x_col, w1_flat, b1_cm, wh, bh)

    # Channel-major output is already NCHW; the reshape is free (contiguous).
    conf = conf_flat.reshape(B, NA, H, W)
    reg = reg_flat.reshape(B, 4 * NA, H, W)
    # TODO(synk): train-mode branch (pos/neg anchor gather + generate_proposals)
    # is host-side glue around this forward pass; not implemented here.
    return conf, reg


def init_params(key, in_features, hidden_dim, n_anchors):
    k1, k2, k3, k4, k5, k6 = jax.random.split(key, 6)
    scale = 0.1
    return {
        # conv1: stored as (kh, kw, Cin, Cout)
        "w1": scale * jax.random.normal(k1, (3, 3, in_features, hidden_dim),
                                        jnp.float32),
        "b1": scale * jax.random.normal(k2, (1, hidden_dim), jnp.float32),
        # conf_head 1x1 conv -> (Cin=hidden, Cout=n_anchors)
        "wc": scale * jax.random.normal(k3, (hidden_dim, n_anchors),
                                        jnp.float32),
        "bc": scale * jax.random.normal(k4, (1, n_anchors), jnp.float32),
        # reg_head 1x1 conv -> (Cin=hidden, Cout=4*n_anchors)
        "wr": scale * jax.random.normal(k5, (hidden_dim, 4 * n_anchors),
                                        jnp.float32),
        "br": scale * jax.random.normal(k6, (1, 4 * n_anchors), jnp.float32),
    }


def _reference_forward(x_nchw, params):
    """Pure-JAX reference (lax.conv) for correctness check."""
    w1 = jnp.transpose(params["w1"], (3, 2, 0, 1))        # OIHW
    out = jax.lax.conv_general_dilated(
        x_nchw, w1, window_strides=(1, 1), padding=((1, 1), (1, 1)),
        dimension_numbers=("NCHW", "OIHW", "NCHW"))
    out = out + params["b1"][0][None, :, None, None]
    out = jnp.maximum(out, 0.0)
    wc = jnp.transpose(params["wc"], (1, 0))[:, :, None, None]   # OIHW 1x1
    wr = jnp.transpose(params["wr"], (1, 0))[:, :, None, None]
    conf = jax.lax.conv_general_dilated(
        out, wc, (1, 1), "VALID",
        dimension_numbers=("NCHW", "OIHW", "NCHW")) \
        + params["bc"][0][None, :, None, None]
    reg = jax.lax.conv_general_dilated(
        out, wr, (1, 1), "VALID",
        dimension_numbers=("NCHW", "OIHW", "NCHW")) \
        + params["br"][0][None, :, None, None]
    return conf, reg


if __name__ == "__main__":
    # Small shapes consistent with the module's forward.
    B, Cin, H, W = 2, 4, 16, 16
    hidden_dim, n_anchors = 32, 9

    key = jax.random.PRNGKey(0)
    kx, kp = jax.random.split(key)
    feature_map = jax.random.normal(kx, (B, Cin, H, W), jnp.float32)
    params = init_params(kp, Cin, hidden_dim, n_anchors)

    conf, reg = proposal_module_forward(feature_map, params)
    conf = jax.block_until_ready(conf)
    reg = jax.block_until_ready(reg)

    conf_ref, reg_ref = _reference_forward(feature_map, params)
    assert conf.shape == (B, n_anchors, H, W)
    assert reg.shape == (B, 4 * n_anchors, H, W)
    assert jnp.allclose(conf, conf_ref, atol=1e-4, rtol=1e-4)
    assert jnp.allclose(reg, reg_ref, atol=1e-4, rtol=1e-4)

    print("KERNEL_OK")
</pallas_src>

<mosaic_0001>
module attributes {stable_mosaic.version = 11 : i64} {
  func.func @_proposal_kernel(%arg0: i32, %arg1: memref<2x36x128xf32, #tpu.memory_space<vmem>>, %arg2: memref<32x36xf32, #tpu.memory_space<vmem>>, %arg3: memref<32x1xf32, #tpu.memory_space<vmem>>, %arg4: memref<45x32xf32, #tpu.memory_space<vmem>>, %arg5: memref<45x1xf32, #tpu.memory_space<vmem>>, %arg6: memref<2x9x128xf32, #tpu.memory_space<vmem>>, %arg7: memref<2x36x128xf32, #tpu.memory_space<vmem>>) attributes {dimension_semantics = [#tpu.dimension_semantics<parallel>], iteration_bounds = array<i64: 2>, scalar_prefetch = 0 : i64, scratch_operands = 0 : i64, tpu.core_type = #tpu.core_type<tc>, window_params = [{transform_indices = @transform_0, window_bounds = array<i64: 2, 36, 128>}, {pipeline_mode = #tpu.pipeline_mode<synchronous>, transform_indices = @transform_1, window_bounds = array<i64: 32, 36>}, {pipeline_mode = #tpu.pipeline_mode<synchronous>, transform_indices = @transform_2, window_bounds = array<i64: 32, 1>}, {pipeline_mode = #tpu.pipeline_mode<synchronous>, transform_indices = @transform_3, window_bounds = array<i64: 45, 32>}, {pipeline_mode = #tpu.pipeline_mode<synchronous>, transform_indices = @transform_4, window_bounds = array<i64: 45, 1>}, {transform_indices = @transform_5, window_bounds = array<i64: 2, 9, 128>}, {transform_indices = @transform_6, window_bounds = array<i64: 2, 36, 128>}]} {
    %c0 = arith.constant 0 : index
    %c0_0 = arith.constant 0 : index
    %0 = vector.load %arg2[%c0, %c0_0] : memref<32x36xf32, #tpu.memory_space<vmem>>, vector<32x36xf32>
    %c0_1 = arith.constant 0 : index
    %c0_2 = arith.constant 0 : index
    %1 = vector.load %arg3[%c0_1, %c0_2] : memref<32x1xf32, #tpu.memory_space<vmem>>, vector<32x1xf32>
    %c0_3 = arith.constant 0 : index
    %c0_4 = arith.constant 0 : index
    %2 = vector.load %arg4[%c0_3, %c0_4] : memref<45x32xf32, #tpu.memory_space<vmem>>, vector<45x32xf32>
    %c0_5 = arith.constant 0 : index
    %c0_6 = arith.constant 0 : index
    %3 = vector.load %arg5[%c0_5, %c0_6] : memref<45x1xf32, #tpu.memory_space<vmem>>, vector<45x1xf32>
    %c0_7 = arith.constant 0 : index
    %c0_8 = arith.constant 0 : index
    %c0_9 = arith.constant 0 : index
    %4 = vector.load %arg1[%c0_7, %c0_8, %c0_9] : memref<2x36x128xf32, #tpu.memory_space<vmem>>, vector<1x36x128xf32>
    %5 = vector.shape_cast %4 : vector<1x36x128xf32> to vector<36x128xf32>
    %cst = arith.constant dense<0.000000e+00> : vector<32x128xf32>
    %6 = tpu.matmul %0, %5, %cst {dimension_numbers = #tpu.dot_dimension_numbers<[1], [0], [0], [1], [0, 0, 1, 1], [], []>} : vector<32x36xf32>, vector<36x128xf32>, vector<32x128xf32> -> vector<32x128xf32>
    %7 = vector.broadcast %1 : vector<32x1xf32> to vector<32x128xf32>
    %8 = arith.addf %6, %7 : vector<32x128xf32>
    %cst_10 = arith.constant 0.000000e+00 : f32
    %9 = vector.broadcast %cst_10 : f32 to vector<32x128xf32>
    %10 = arith.maximumf %8, %9 : vector<32x128xf32>
    %cst_11 = arith.constant dense<0.000000e+00> : vector<45x128xf32>
    %11 = tpu.matmul %2, %10, %cst_11 {dimension_numbers = #tpu.dot_dimension_numbers<[1], [0], [0], [1], [0, 0, 1, 1], [], []>} : vector<45x32xf32>, vector<32x128xf32>, vector<45x128xf32> -> vector<45x128xf32>
    %12 = vector.broadcast %3 : vector<45x1xf32> to vector<45x128xf32>
    %13 = arith.addf %11, %12 : vector<45x128xf32>
    %14 = vector.extract_strided_slice %13 {offsets = [0, 0], sizes = [9, 128], strides = [1, 1]} : vector<45x128xf32> to vector<9x128xf32>
    %c0_12 = arith.constant 0 : index
    %c0_13 = arith.constant 0 : index
    %c0_14 = arith.constant 0 : index
    %15 = vector.load %arg6[%c0_12, %c0_13, %c0_14] : memref<2x9x128xf32, #tpu.memory_space<vmem>>, vector<1x9x128xf32>
    %16 = vector.shape_cast %15 : vector<1x9x128xf32> to vector<9x128xf32>
    %17 = vector.shape_cast %14 : vector<9x128xf32> to vector<1x9x128xf32>
    tpu.vector_store %arg6[%c0_12, %c0_13, %c0_14], %17 {strides = array<i32>} : memref<2x9x128xf32, #tpu.memory_space<vmem>>, vector<1x9x128xf32>,
    %18 = vector.extract_strided_slice %13 {offsets = [9, 0], sizes = [36, 128], strides = [1, 1]} : vector<45x128xf32> to vector<36x128xf32>
    %c0_15 = arith.constant 0 : index
    %c0_16 = arith.constant 0 : index
    %c0_17 = arith.constant 0 : index
    %19 = vector.load %arg7[%c0_15, %c0_16, %c0_17] : memref<2x36x128xf32, #tpu.memory_space<vmem>>, vector<1x36x128xf32>
    %20 = vector.shape_cast %19 : vector<1x36x128xf32> to vector<36x128xf32>
    %21 = vector.shape_cast %18 : vector<36x128xf32> to vector<1x36x128xf32>
    tpu.vector_store %arg7[%c0_15, %c0_16, %c0_17], %21 {strides = array<i32>} : memref<2x36x128xf32, #tpu.memory_space<vmem>>, vector<1x36x128xf32>,
    %c1 = arith.constant 1 : index
    %c0_18 = arith.constant 0 : index
    %c0_19 = arith.constant 0 : index
    %22 = vector.load %arg1[%c1, %c0_18, %c0_19] : memref<2x36x128xf32, #tpu.memory_space<vmem>>, vector<1x36x128xf32>
    %23 = vector.shape_cast %22 : vector<1x36x128xf32> to vector<36x128xf32>
    %cst_20 = arith.constant dense<0.000000e+00> : vector<32x128xf32>
    %24 = tpu.matmul %0, %23, %cst_20 {dimension_numbers = #tpu.dot_dimension_numbers<[1], [0], [0], [1], [0, 0, 1, 1], [], []>} : vector<32x36xf32>, vector<36x128xf32>, vector<32x128xf32> -> vector<32x128xf32>
    %25 = vector.broadcast %1 : vector<32x1xf32> to vector<32x128xf32>
    %26 = arith.addf %24, %25 : vector<32x128xf32>
    %cst_21 = arith.constant 0.000000e+00 : f32
    %27 = vector.broadcast %cst_21 : f32 to vector<32x128xf32>
    %28 = arith.maximumf %26, %27 : vector<32x128xf32>
    %cst_22 = arith.constant dense<0.000000e+00> : vector<45x128xf32>
    %29 = tpu.matmul %2, %28, %cst_22 {dimension_numbers = #tpu.dot_dimension_numbers<[1], [0], [0], [1], [0, 0, 1, 1], [], []>} : vector<45x32xf32>, vector<32x128xf32>, vector<45x128xf32> -> vector<45x128xf32>
    %30 = vector.broadcast %3 : vector<45x1xf32> to vector<45x128xf32>
    %31 = arith.addf %29, %30 : vector<45x128xf32>
    %32 = vector.extract_strided_slice %31 {offsets = [0, 0], sizes = [9, 128], strides = [1, 1]} : vector<45x128xf32> to vector<9x128xf32>
    %c1_23 = arith.constant 1 : index
    %c0_24 = arith.constant 0 : index
    %c0_25 = arith.constant 0 : index
    %33 = vector.load %arg6[%c1_23, %c0_24, %c0_25] : memref<2x9x128xf32, #tpu.memory_space<vmem>>, vector<1x9x128xf32>
    %34 = vector.shape_cast %33 : vector<1x9x128xf32> to vector<9x128xf32>
    %35 = vector.shape_cast %32 : vector<9x128xf32> to vector<1x9x128xf32>
    tpu.vector_store %arg6[%c1_23, %c0_24, %c0_25], %35 {strides = array<i32>} : memref<2x9x128xf32, #tpu.memory_space<vmem>>, vector<1x9x128xf32>,
    %36 = vector.extract_strided_slice %31 {offsets = [9, 0], sizes = [36, 128], strides = [1, 1]} : vector<45x128xf32> to vector<36x128xf32>
    %c1_26 = arith.constant 1 : index
    %c0_27 = arith.constant 0 : index
    %c0_28 = arith.constant 0 : index
    %37 = vector.load %arg7[%c1_26, %c0_27, %c0_28] : memref<2x36x128xf32, #tpu.memory_space<vmem>>, vector<1x36x128xf32>
    %38 = vector.shape_cast %37 : vector<1x36x128xf32> to vector<36x128xf32>
    %39 = vector.shape_cast %36 : vector<36x128xf32> to vector<1x36x128xf32>
    tpu.vector_store %arg7[%c1_26, %c0_27, %c0_28], %39 {strides = array<i32>} : memref<2x36x128xf32, #tpu.memory_space<vmem>>, vector<1x36x128xf32>,
    return
  }
  func.func @transform_0(%arg0: i32) -> (i32, i32, i32) {
    %c0_i32 = arith.constant 0 : i32
    %c0_i32_0 = arith.constant 0 : i32
    %c0_i32_1 = arith.constant 0 : i32
    return %c0_i32, %c0_i32_0, %arg0 : i32, i32, i32
  }
  func.func @transform_1(%arg0: i32) -> (i32, i32) {
    %c0_i32 = arith.constant 0 : i32
    %c0_i32_0 = arith.constant 0 : i32
    %c0_i32_1 = arith.constant 0 : i32
    return %c0_i32, %c0_i32_0 : i32, i32
  }
  func.func @transform_2(%arg0: i32) -> (i32, i32) {
    %c0_i32 = arith.constant 0 : i32
    %c0_i32_0 = arith.constant 0 : i32
    %c0_i32_1 = arith.constant 0 : i32
    return %c0_i32, %c0_i32_0 : i32, i32
  }
  func.func @transform_3(%arg0: i32) -> (i32, i32) {
    %c0_i32 = arith.constant 0 : i32
    %c0_i32_0 = arith.constant 0 : i32
    %c0_i32_1 = arith.constant 0 : i32
    return %c0_i32, %c0_i32_0 : i32, i32
  }
  func.func @transform_4(%arg0: i32) -> (i32, i32) {
    %c0_i32 = arith.constant 0 : i32
    %c0_i32_0 = arith.constant 0 : i32
    %c0_i32_1 = arith.constant 0 : i32
    return %c0_i32, %c0_i32_0 : i32, i32
  }
  func.func @transform_5(%arg0: i32) -> (i32, i32, i32) {
    %c0_i32 = arith.constant 0 : i32
    %c0_i32_0 = arith.constant 0 : i32
    %c0_i32_1 = arith.constant 0 : i32
    return %c0_i32, %c0_i32_0, %arg0 : i32, i32, i32
  }
  func.func @transform_6(%arg0: i32) -> (i32, i32, i32) {
    %c0_i32 = arith.constant 0 : i32
    %c0_i32_0 = arith.constant 0 : i32
    %c0_i32_1 = arith.constant 0 : i32
    return %c0_i32, %c0_i32_0, %arg0 : i32, i32, i32
  }
}

</mosaic_0001>

<bundles_post_ra>
// kernel: tpu_custom_call.1
= control target key start
LH: loop header
LB: loop body
LE: loop exit
PB: predicated region body
PF: predicated region fallthrough
CT: control target
= control target key end

     0   :  { %s1283_s21 = smov 0   ;;  %s1285_s22 = smov 0   ;;  %s1485_s0 = inlined_call_operand.vmem [shape: f32[2,36,256], index: 0, kind: input, shape index: {}]   ;;  %s1486_s1 = inlined_call_operand.vmem [shape: f32[32,36], index: 1, kind: input, shape index: {}]   ;;  %s1487_s2 = inlined_call_operand.vmem [shape: f32[32,1], index: 2, kind: input, shape index: {}]   ;;  %s1488_s3 = inlined_call_operand.vmem [shape: f32[45,32], index: 3, kind: input, shape index: {}]   ;;  %s1489_s4 = inlined_call_operand.vmem [shape: f32[45,1], index: 4, kind: input, shape index: {}]   ;;  %s1490_s5 = inlined_call_operand.vmem [shape: f32[2,9,256], index: 5, kind: output, shape index: {0}]   ;;  %s1491_s6 = inlined_call_operand.vmem [shape: f32[2,36,256], index: 6, kind: output, shape index: {1}]  }
   0x1   :  { %s1287_s23 = smov 0  }
   0x2 LB: > { %s1299_s24 = sadd.s32 4294967295, %s1245_s23   ;;  %s1302_s25 = sadd.s32 1, %s1245_s23   ;;  %s1245_s23 = sphi %s1287_s23, %s1495_s23   ;;  %s1241_s22 = sphi %s1285_s22, %s1494_s22   ;;  %s1237_s21 = sphi %s1283_s21, %s1493_s21  }
   0x3   : > { %s21_s26 = ssub.s32 %s1245_s23, %s1302_s25  ;;  %s24_s27 = sadd.s32 1, %s1241_s22 }
   0x4   : > { %p22_p0 = scmp.eq.s32.totalorder %s21_s26, 0  ;;  %p31_p1 = scmp.ne.s32.totalorder %s1241_s22, %s1237_s21 }
   0x5   : > { %p32_p2 = scmp.eq.s32.totalorder %s1245_s23, 0  ;;  %p145_p3 = scmp.eq.s32.totalorder %s1299_s24, 1 }
   0x6   : > { %s1312_s28 = scalar_select %p22_p0, %s1241_s22, %s24_s27  }
   0x7   : > { %p33_p4 = por %p32_p2, %p31_p1  ;;  %p1314_p5 = por %p145_p3, %p31_p1 }
   0x8   : > { %p1047_p6 = scmp.ge.s32.totalorder %s1245_s23, 2 }
   0xa   : > { %205 = sbr.rel (%p1047_p6) target bundleno = 24 (0x18), region = 32 }
   0xf   : > { %208 = sbr.rel (!%p33_p4) target bundleno = 24 (0x18), region = 36  ;;  %s210_s30 = sand.u32 (%p33_p4), 1, %s1241_s22  }
  0x10   : > { %s1048_s7 = sshll.u32 (%p33_p4), %s1245_s23, 3  ;;  %s1194_s8 = smul.u32 (%p33_p4), 80, %s210_s30 }
  0x11   : > { %s214_s11 = scalar_lea.vmem (%p33_p4), %s1485_s0, %s1048_s7 }
  0x12   : > { %v261_v0 = vld [vmem:[%s214_s11] sm:$0xff] (%p33_p4)  ;;  %v263_v1 = vld [vmem:[%s214_s11 + $0x10] sm:$0xff] (%p33_p4)  ;;  %s212_s12 = scalar_lea.vmem (%p33_p4), [#allocation2], %s1194_s8 }
  0x13   : > { %v265_v2 = vld [vmem:[%s214_s11 + $0x20] sm:$0xff] (%p33_p4)  ;;  %v267_v3 = vld [vmem:[%s214_s11 + $0x30] sm:$0xff] (%p33_p4)  ;;  %262 = vst [vmem:[%s212_s12] sm:$0xff] (%p33_p4), %v261_v0  ;;  %264 = vst [vmem:[%s212_s12 + $0x8] sm:$0xff] (%p33_p4), %v263_v1 }
  0x14   : > { %v269_v4 = vld [vmem:[%s214_s11 + $0x40] sm:$0xff]  ;;  %v271_v5 = vld [vmem:[%s214_s11 + $0x50] sm:$0xff]  ;;  %266 = vst [vmem:[%s212_s12 + $0x10] sm:$0xff] %v265_v2  ;;  %268 = vst [vmem:[%s212_s12 + $0x18] sm:$0xff] %v267_v3 }
  0x15   : > { %270 = vst [vmem:[%s212_s12 + $0x20] sm:$0xff] %v269_v4  ;;  %272 = vst [vmem:[%s212_s12 + $0x28] sm:$0xff] %v271_v5  ;;  %v273_v6 = vld [vmem:[%s214_s11 + $0x60] sm:$0xff]  ;;  %v275_v7 = vld [vmem:[%s214_s11 + $0x70] sm:$0xff] }
  0x16   : > { %v277_v8 = vld [vmem:[%s214_s11 + $0x80] sm:$0xff]  ;;  %274 = vst [vmem:[%s212_s12 + $0x30] sm:$0xff] %v273_v6  ;;  %276 = vst [vmem:[%s212_s12 + $0x38] sm:$0xff] %v275_v7  ;;  %v279_v9 = vld [vmem:[%s214_s11 + $0x90] sm:$0xff] }
  0x17   : > { %278 = vst [vmem:[%s212_s12 + $0x40] sm:$0xff] %v277_v8  ;;  %280 = vst [vmem:[%s212_s12 + $0x48] sm:$0xff] %v279_v9 }
  0x18 PF: > { %p1049_p7 = scmp.ge.s32.totalorder %s1245_s23, 1  ;;  %p285_p8 = scmp.lt.s32.totalorder %s1245_s23, 3 }
  0x1a   : > { %p286_p9 = pnand %p1049_p7, %p285_p8 }
  0x1b   : > { %s292_s13 = sand.u32 (!%p286_p9), 1, %s1237_s21  }
  0x1c   : > { %289 = sbr.rel (%p286_p9) target bundleno = 481 (0x1e1), region = 74  ;;  %s1050_s7 = sshll.u32 (!%p286_p9), %s292_s13, 5 }
  0x1d   : > { %s1332_s16 = smul.u32 (!%p286_p9), 80, %s292_s13  ;;  %s1430_s8 = scalar_lea.vmem (!%p286_p9), [#allocation3], %s1050_s7 }
  0x1f   : > { %s1342_s23 = scalar_lea.vmem (!%p286_p9), [#allocation2], %s1332_s16  ;;  %s1434_s9 = scalar_lea.vmem (!%p286_p9), [#allocation4], %s1332_s16 }
  0x21   : > { %v324_v10 = vld [vmem:[%s1486_s1] sm:$0xff]  ;;  %vm369_vm0 = vcmask 293888   ;;  %v331_v11 = vld [vmem:[%s1487_s2 + $0x18] sm:$0xff]  ;;  %vm382_vm1 = vcmask 1043456   ;;  %v1247_v12 = vmov 0   ;;  %v329_v13 = vld [vmem:[%s1487_s2 + $0x8] sm:$0xff] }
  0x22   : > { %1138 = vmatprep.mubr.msk.f32.mxu0 %vm369_vm0, %v324_v10  ;;  %1221 = vset.pattern.permute.xlu0 %v1247_v12  ;;  %v348_v14 = vld [vmem:[%s1342_s23 + $0x20] sm:$0xf]  ;;  %v347_v15 = vld [vmem:[%s1342_s23 + $0x18] sm:$0xff]  ;;  %v346_v18 = vld [vmem:[%s1342_s23 + $0x10] sm:$0xff]  ;;  %vm505_vm2 = vcmask 261120   ;;  %s1086_s21 = sshll.u32 (%p1314_p5), %s1299_s24, 3 }
  0x23   : > { %1222 = vset.pattern.permute.xlu1 %v1247_v12  ;;  %366 = vperm.xlu0 %1221, %v331_v11   ;;  %v330_v16 = vld [vmem:[%s1487_s2 + $0x10] sm:$0xff]  ;;  %v328_v17 = vld [vmem:[%s1487_s2] sm:$0xff]  ;;  %v345_v19 = vld [vmem:[%s1342_s23 + $0x8] sm:$0xff]  ;;  %s840_s10 = scalar_lea.vmem (%p1314_p5), %s1490_s5, %s1086_s21 }
  0x24   : > { %356 = vperm.xlu1 %1222, %v329_v13   ;;  %1128 = vmatprep.subr.msk.mxu0 %vm382_vm1, %v348_v14  ;;  %v338_v20 = vld [vmem:[%s1489_s4] sm:$0xff]  ;;  %v339_v21 = vld [vmem:[%s1489_s4 + $0x8] sm:$0xff]  ;;  %v326_v25 = vld [vmem:[%s1486_s1 + $0x10] sm:$0xff] }
  0x25   : > { %1129 = vmatpush3.msk.msra.mxu0 %vm382_vm1, %v348_v14  ;;  %v344_v22 = vld [vmem:[%s1342_s23] sm:$0xff]  ;;  %v325_v23 = vld [vmem:[%s1486_s1 + $0x8] sm:$0xff]  ;;  %v341_v28 = vld [vmem:[%s1489_s4 + $0x18] sm:$0xff] }
  0x26   : > { %1130 = vmatprep.subr.mxu0 %v347_v15  ;;  %v1066_v24 = vld [vmem:[%s1342_s23 + $0x48] sm:$0xf]  ;;  %v1065_v26 = vld [vmem:[%s1342_s23 + $0x40] sm:$0xff]  ;;  %v1064_v30 = vld [vmem:[%s1342_s23 + $0x38] sm:$0xff] }
  0x27   : > { %361 = vperm.xlu0 %1221, %v330_v16   ;;  %1131 = vmatpush3.msra.mxu0 %v347_v15  ;;  %v340_v27 = vld [vmem:[%s1489_s4 + $0x10] sm:$0xff]  ;;  %v327_v29 = vld [vmem:[%s1486_s1 + $0x18] sm:$0xff]  ;;  %v342_v32 = vld [vmem:[%s1489_s4 + $0x20] sm:$0xff] }
  0x28   : > { %351 = vperm.xlu1 %1222, %v328_v17   ;;  %1132 = vmatprep.subr.mxu0 %v346_v18  ;;  %v1063_v31 = vld [vmem:[%s1342_s23 + $0x30] sm:$0xff]  ;;  %v343_v33 = vld [vmem:[%s1489_s4 + $0x28] sm:$0x1f]  ;;  %v335_v62 = vld [vmem:[%s1488_s3 + $0x18] sm:$0xff] }
  0x29   : > { %1133 = vmatpush3.msra.mxu0 %v346_v18  ;;  %v1062_v34 = vld [vmem:[%s1342_s23 + $0x28] sm:$0xff]  ;;  %v332_v35 = vld [vmem:[%s1488_s3] sm:$0xff]  ;;  %v334_v57 = vld [vmem:[%s1488_s3 + $0x10] sm:$0xff] }
  0x2a   : > { %1134 = vmatprep.subr.mxu0 %v345_v19  ;;  %1152 = vmatprep.mubr.msk.f32.mxu1 %vm505_vm2, %v332_v35  ;;  %v333_v55 = vld [vmem:[%s1488_s3 + $0x8] sm:$0xff]  ;;  %v336_v1 = vld [vmem:[%s1488_s3 + $0x20] sm:$0xff] }
  0x2b   : > { %477 = vperm.xlu0 %1221, %v338_v20   ;;  %1135 = vmatpush3.msra.mxu0 %v345_v19  ;;  %v337_v3 = vld [vmem:[%s1488_s3 + $0x28] sm:$0x1f] }
  0x2c   : > { %482 = vperm.xlu1 %1222, %v339_v21   ;;  %1136 = vmatprep.subr.mxu0 %v344_v22 }
  0x2d   : > { %1137 = vmatpush3.msra.mxu0 %v344_v22 }
  0x2e   : > { %1139 = vmatmul.mubr.msk.f32.vlgmr.msra.gmra.mxu0 %vm369_vm0, %v325_v23  ;;  %1161 = vmatprep.subr.msk.mxu0 %vm382_vm1, %v1066_v24 }
  0x2f   : > { %1162 = vmatpush3.msk.msra.mxu0 %vm382_vm1, %v1066_v24  ;;  %1141 = vmatprep.mubr.msk.f32.mxu0 %vm369_vm0, %v326_v25 }
  0x30   : > { %1163 = vmatprep.subr.mxu0 %v1065_v26  ;;  %487 = vperm.xlu0 %1221, %v340_v27  }
  0x31   : > { %1164 = vmatpush3.msra.mxu0 %v1065_v26  ;;  %492 = vperm.xlu1 %1222, %v341_v28  }
  0x32   : > { %1142 = vmatmul.mubr.msk.f32.gmra.mxu0 %vm369_vm0, %v327_v29  ;;  %1165 = vmatprep.subr.mxu0 %v1064_v30 }
  0x33   : > { %1166 = vmatpush3.msra.mxu0 %v1064_v30  ;;  %1171 = vmatprep.mubr.msk.f32.mxu0 %vm369_vm0, %v324_v10 }
  0x34   : > { %1167 = vmatprep.subr.mxu0 %v1063_v31  ;;  %497 = vperm.xlu0 %1221, %v342_v32  }
  0x35   : > { %1168 = vmatpush3.msra.mxu0 %v1063_v31  ;;  %502 = vperm.xlu1 %1222, %v343_v33  }
  0x36   : > { %1169 = vmatprep.subr.mxu0 %v1062_v34 }
  0x37   : > { %1170 = vmatpush3.msra.mxu0 %v1062_v34 }
  0x38   : > { %1172 = vmatmul.mubr.msk.f32.vlgmr.msra.gmra.mxu0 %vm369_vm0, %v325_v23 }
  0x39   : > { %1174 = vmatprep.mubr.msk.f32.mxu0 %vm369_vm0, %v326_v25 }
  0x3c   : > { %1175 = vmatmul.mubr.msk.f32.gmra.mxu0 %vm369_vm0, %v327_v29 }
  0x9e   : > { %v367_v36 = vpop.permute.xlu0 %366 }
  0x9f   : > { %v357_v38 = vpop.permute.xlu1 %356 }
  0xa2   : > { %v362_v42 = vpop.permute.xlu0 %361 }
  0xa3   : > { %v352_v47 = vpop.permute.xlu1 %351 }
  0xa6   : > { %v478_v6 = vpop.permute.xlu0 %477 }
  0xa7   : > { %v483_v5 = vpop.permute.xlu1 %482 }
  0xab   : > { %v488_v12 = vpop.permute.xlu0 %487 }
  0xac   : > { %v493_v9 = vpop.permute.xlu1 %492 }
  0xaf   : > { %v498_v20 = vpop.permute.xlu0 %497 }
  0xb0   : > { %v503_v17 = vpop.permute.xlu1 %502 }
  0xee   : > { %v1140_v37 = vpop.f32.mrf.mxu0 }
  0xef   : > { %v458_v44 = vadd.f32 %v1140_v37, %v357_v38 }
  0xf0   : > { %v452_v39 = vpop.f32.mrf.mxu0 }
  0xf1   : > { %v453_v48 = vadd.f32 %v452_v39, %v352_v47  ;;  %v472_v51 = vmax.f32 %v458_v44, 0.0 }
  0xf2   : > { %v1143_v40 = vpop.f32.mrf.mxu0 }
  0xf3   : > { %v468_v41 = vadd.f32 %v1143_v40, %v367_v36  ;;  %v471_v53 = vmax.f32 %v453_v48, 0.0 }
  0xf4   : > { %v462_v43 = vpop.f32.mrf.mxu0 }
  0xf5   : > { %v474_v45 = vmax.f32 %v468_v41, 0.0  ;;  %v463_v46 = vadd.f32 %v462_v43, %v362_v42 }
  0xf7   : > { %v473_v49 = vmax.f32 %v463_v46, 0.0  ;;  %1144 = vmatprep.subr.mxu1 %v474_v45 }
  0xf8   : > { %1145 = vmatpush3.msra.mxu1 %v474_v45  ;;  %v1173_v50 = vpop.f32.mrf.mxu0 }
  0xf9   : > { %1146 = vmatprep.subr.mxu1 %v473_v49  ;;  %v707_v59 = vadd.f32 %v1173_v50, %v357_v38 }
  0xfa   : > { %1147 = vmatpush3.msra.mxu1 %v473_v49  ;;  %v701_v52 = vpop.f32.mrf.mxu0 }
  0xfb   : > { %1148 = vmatprep.subr.mxu1 %v472_v51  ;;  %v702_v63 = vadd.f32 %v701_v52, %v352_v47  ;;  %v721_v2 = vmax.f32 %v707_v59, 0.0 }
  0xfc   : > { %1149 = vmatpush3.msra.mxu1 %v472_v51  ;;  %v1176_v54 = vpop.f32.mrf.mxu0 }
  0xfd   : > { %v717_v56 = vadd.f32 %v1176_v54, %v367_v36  ;;  %1150 = vmatprep.subr.mxu1 %v471_v53  ;;  %v720_v4 = vmax.f32 %v702_v63, 0.0 }
  0xfe   : > { %1151 = vmatpush3.msra.mxu1 %v471_v53  ;;  %v711_v58 = vpop.f32.mrf.mxu0 }
  0xff   : > { %v723_v60 = vmax.f32 %v717_v56, 0.0  ;;  %v712_v61 = vadd.f32 %v711_v58, %v362_v42  ;;  %1153 = vmatmul.mubr.msk.f32.vlgmr.msra.gmra.mxu1 %vm505_vm2, %v333_v55 }
 0x100   : > { %1155 = vmatprep.mubr.msk.f32.mxu1 %vm505_vm2, %v334_v57 }
 0x101   : > { %v722_v0 = vmax.f32 %v712_v61, 0.0  ;;  %1177 = vmatprep.subr.mxu1 %v723_v60 }
 0x102   : > { %1178 = vmatpush3.msra.mxu1 %v723_v60 }
 0x103   : > { %1156 = vmatmul.mubr.msk.f32.gmra.mxu1 %vm505_vm2, %v335_v62  ;;  %1179 = vmatprep.subr.mxu1 %v722_v0 }
 0x104   : > { %1180 = vmatpush3.msra.mxu1 %v722_v0  ;;  %1158 = vmatprep.mubr.msk.f32.mxu1 %vm505_vm2, %v336_v1 }
 0x105   : > { %1181 = vmatprep.subr.mxu1 %v721_v2 }
 0x106   : > { %1182 = vmatpush3.msra.mxu1 %v721_v2 }
 0x107   : > { %1159 = vmatmul.mubr.msk.f32.gmra.mxu1 %vm505_vm2, %v337_v3  ;;  %1183 = vmatprep.subr.mxu1 %v720_v4 }
 0x108   : > { %1184 = vmatpush3.msra.mxu1 %v720_v4  ;;  %1185 = vmatprep.mubr.msk.f32.mxu1 %vm505_vm2, %v332_v35 }
 0x10b   : > { %1186 = vmatmul.mubr.msk.f32.vlgmr.msra.gmra.mxu1 %vm505_vm2, %v333_v55 }
 0x10c   : > { %1188 = vmatprep.mubr.msk.f32.mxu1 %vm505_vm2, %v334_v57 }
 0x10f   : > { %1189 = vmatmul.mubr.msk.f32.gmra.mxu1 %vm505_vm2, %v335_v62 }
 0x110   : > { %1191 = vmatprep.mubr.msk.f32.mxu1 %vm505_vm2, %v336_v1 }
 0x113   : > { %1192 = vmatmul.mubr.msk.f32.gmra.mxu1 %vm505_vm2, %v337_v3 }
 0x1bf   : > { %v1154_v7 = vpop.f32.mrf.mxu1 }
 0x1c0   : > { %v596_v8 = vadd.f32 %v1154_v7, %v483_v5 }
 0x1c1   : > { %v590_v10 = vpop.f32.mrf.mxu1 }
 0x1c2   : > { %620 = vst [vmem:[%s1430_s8 + $0x8] sm:$0x1] %v596_v8  ;;  %621 = vst [vmem:[%s1434_s9 - $0x1] sm:$0xfe] %v596_v8  ;;  %v591_v11 = vadd.f32 %v590_v10, %v478_v6 }
 0x1c3   : > { %v1157_v13 = vpop.f32.mrf.mxu1 }
 0x1c4   : > { %619 = vst [vmem:[%s1430_s8] sm:$0xff] %v591_v11  ;;  %v606_v14 = vadd.f32 %v1157_v13, %v493_v9 }
 0x1c5   : > { %v600_v15 = vpop.f32.mrf.mxu1 }
 0x1c6   : > { %623 = vst [vmem:[%s1434_s9 + $0xf] sm:$0xff] %v606_v14  ;;  %v601_v16 = vadd.f32 %v600_v15, %v488_v12 }
 0x1c7   : > { %v1160_v18 = vpop.f32.mrf.mxu1 }
 0x1c8   : > { %622 = vst [vmem:[%s1434_s9 + $0x7] sm:$0xff] %v601_v16  ;;  %v616_v19 = vadd.f32 %v1160_v18, %v503_v17 }
 0x1c9   : > { %v610_v21 = vpop.f32.mrf.mxu1  ;;  %v877_v36 = vld [vmem:[%s1430_s8 + $0x8] sm:$0xff] (%p1314_p5) }
 0x1ca   : > { %625 = vst [vmem:[%s1434_s9 + $0x1f] sm:$0x1f] %v616_v19  ;;  %v611_v22 = vadd.f32 %v610_v21, %v498_v20  ;;  %878 = vst [vmem:[%s840_s10 + $0x10] sm:$0xff] (%p1314_p5), %v877_v36 }
 0x1cb   : > { %v1187_v23 = vpop.f32.mrf.mxu1  ;;  %v875_v35 = vld [vmem:[%s1430_s8] sm:$0xff] (%p1314_p5) }
 0x1cc   : > { %624 = vst [vmem:[%s1434_s9 + $0x17] sm:$0xff] %v611_v22  ;;  %v796_v24 = vadd.f32 %v1187_v23, %v483_v5  ;;  %876 = vst [vmem:[%s840_s10] sm:$0xff] (%p1314_p5), %v875_v35 }
 0x1cd   : > { %v790_v25 = vpop.f32.mrf.mxu1 }
 0x1ce   : > { %1079 = vst [vmem:[%s1430_s8 + $0x18] sm:$0x1] %v796_v24  ;;  %1080 = vst [vmem:[%s1434_s9 + $0x27] sm:$0xfe] %v796_v24  ;;  %v791_v26 = vadd.f32 %v790_v25, %v478_v6 }
 0x1cf   : > { %v1190_v27 = vpop.f32.mrf.mxu1 }
 0x1d0   : > { %1078 = vst [vmem:[%s1430_s8 + $0x10] sm:$0xff] %v791_v26  ;;  %v806_v28 = vadd.f32 %v1190_v27, %v493_v9 }
 0x1d1   : > { %v800_v29 = vpop.f32.mrf.mxu1 }
 0x1d2   : > { %1082 = vst [vmem:[%s1434_s9 + $0x37] sm:$0xff] %v806_v28  ;;  %v801_v30 = vadd.f32 %v800_v29, %v488_v12 }
 0x1d3   : > { %v1193_v31 = vpop.f32.mrf.mxu1 }
 0x1d4   : > { %1081 = vst [vmem:[%s1434_s9 + $0x2f] sm:$0xff] %v801_v30  ;;  %v816_v32 = vadd.f32 %v1193_v31, %v503_v17  ;;  %838 = sbr.rel (!%p1314_p5) target bundleno = 473 (0x1d9), region = 82 }
 0x1d5   : > { %v810_v33 = vpop.f32.mrf.mxu1  ;;  %v881_v38 = vld [vmem:[%s1430_s8 + $0x18] sm:$0xff] (%p1314_p5) }
 0x1d6   : > { %1084 = vst [vmem:[%s1434_s9 + $0x47] sm:$0x1f] %v816_v32  ;;  %v811_v34 = vadd.f32 %v810_v33, %v498_v20  ;;  %882 = vst [vmem:[%s840_s10 + $0x30] sm:$0xff] (%p1314_p5), %v881_v38 }
 0x1d7   : > { %v879_v37 = vld [vmem:[%s1430_s8 + $0x10] sm:$0xff] (%p1314_p5) }
 0x1d8   : > { %1083 = vst [vmem:[%s1434_s9 + $0x3f] sm:$0xff] %v811_v34  ;;  %880 = vst [vmem:[%s840_s10 + $0x20] sm:$0xff] (%p1314_p5), %v879_v37 }
 0x1d9 PF: > { %888 = sbr.rel (!%p1314_p5) target bundleno = 481 (0x1e1), region = 120  ;;  %s1087_s11 = sshll.u32 (%p1314_p5), %s1299_s24, 3  ;;  %v937_v39 = vld [vmem:[%s1434_s9] sm:$0xff] (%p1314_p5)  ;;  %v939_v40 = vld [vmem:[%s1434_s9 + $0x8] sm:$0xff] (%p1314_p5)  ;;  %v941_v41 = vld [vmem:[%s1434_s9 + $0x10] sm:$0xff] (%p1314_p5) }
 0x1da   : > { %s890_s14 = scalar_lea.vmem (%p1314_p5), %s1491_s6, %s1087_s11  ;;  %v943_v42 = vld [vmem:[%s1434_s9 + $0x18] sm:$0xff] (%p1314_p5)  ;;  %v945_v43 = vld [vmem:[%s1434_s9 + $0x20] sm:$0xff] (%p1314_p5) }
 0x1db   : > { %v947_v44 = vld [vmem:[%s1434_s9 + $0x28] sm:$0xff] (%p1314_p5)  ;;  %938 = vst [vmem:[%s890_s14] sm:$0xff] (%p1314_p5), %v937_v39  ;;  %940 = vst [vmem:[%s890_s14 + $0x10] sm:$0xff] (%p1314_p5), %v939_v40  ;;  %v949_v45 = vld [vmem:[%s1434_s9 + $0x30] sm:$0xff] (%p1314_p5) }
 0x1dc   : > { %942 = vst [vmem:[%s890_s14 + $0x20] sm:$0xff] (%p1314_p5), %v941_v41  ;;  %944 = vst [vmem:[%s890_s14 + $0x30] sm:$0xff] (%p1314_p5), %v943_v42 }
 0x1dd   : > { %946 = vst [vmem:[%s890_s14 + $0x40] sm:$0xff] (%p1314_p5), %v945_v43  ;;  %948 = vst [vmem:[%s890_s14 + $0x50] sm:$0xff] (%p1314_p5), %v947_v44  ;;  %v955_v48 = vld [vmem:[%s1434_s9 + $0x48] sm:$0xff] (%p1314_p5) }
 0x1de   : > { %950 = vst [vmem:[%s890_s14 + $0x60] sm:$0xff] %v949_v45  ;;  %956 = vst [vmem:[%s890_s14 + $0x90] sm:$0xff] %v955_v48 }
 0x1df   : > { %v951_v46 = vld [vmem:[%s1434_s9 + $0x38] sm:$0xff]  ;;  %v953_v47 = vld [vmem:[%s1434_s9 + $0x40] sm:$0xff] }
 0x1e0   : > { %952 = vst [vmem:[%s890_s14 + $0x70] sm:$0xff] %v951_v46  ;;  %954 = vst [vmem:[%s890_s14 + $0x80] sm:$0xff] %v953_v47 }
 0x1e1 PF: > { %p14_p10 = scmp.ge.s32.totalorder %s1302_s25, 4   ;;  %s1493_s21 = smov %s1241_s22 }
 0x1e2   : > { %s1494_s22 = smov %s1312_s28  ;;  %s1495_s23 = smov %s1302_s25 }
 0x1e3   :  { %16 = sbr.rel (!%p14_p10) target bundleno = 2 (0x2), region = 204 }

</bundles_post_ra>
